<compile_context>
chip_gen: v7x
topology: tpu7x:2x2x1
jax: 0.10.0
libtpu: 0.0.40
codegen_flags: <defaults>
</compile_context>

<pallas_src>
import functools

import jax
import jax.numpy as jnp
from jax.experimental import pallas as pl
from jax.experimental.pallas import tpu as pltpu


def _round_up(n, m):
    return ((n + m - 1) // m) * m


def _choose_tiling(batch, block_batch):
    """Pick a lane-dense batch tile and padded batch extent.

    Returns (tb, b_pad) with tb a multiple of 128 and b_pad a multiple of tb.
    Once batch >= 256, tb is capped so the grid has an even number of
    steps >= 2 (balanced 2-TensorCore split on v7x; harmless on v5e/v6e).
    """
    b128 = _round_up(max(batch, 1), 128)
    tb = min(_round_up(max(block_batch, 1), 128), b128)
    if b128 >= 2 * 128:
        tb = min(tb, b128 // 2)          # guarantee >= 2 grid steps
    tb = max(128, (tb // 128) * 128)     # keep tb a multiple of 128
    n_steps = -(-b128 // tb)             # ceil div
    if n_steps > 1 and n_steps % 2 == 1:
        n_steps += 1                     # even step count -> balanced megacore split
    return tb, n_steps * tb


def _dqn_mlp_kernel(xT_ref, w0_ref, b0_ref, w1_ref, b1_ref, w2_ref, b2_ref,
                    out_ref, *, compute_dtype):
    """Computes y^T = W2 @ relu(W1 @ relu(W0 @ x^T + b0) + b1) + b2.

    Every operand / intermediate keeps the batch (TB, multiple of 128) on the
    128-lane axis; feature dims (<=32) sit on sublanes.
    """
    def cast(v):
        return v if compute_dtype is None else v.astype(compute_dtype)

    xT = cast(xT_ref[...])        # (S , TB)  lane-dense
    w0 = cast(w0_ref[...])        # (H0, S)
    w1 = cast(w1_ref[...])        # (H1, H0)
    w2 = cast(w2_ref[...])        # (A , H1)

    # Layer 0: (H0, S) @ (S, TB) -> (H0, TB), f32 accumulation on the MXU.
    h0 = jnp.dot(w0, xT, preferred_element_type=jnp.float32)
    h0 = jnp.maximum(h0 + b0_ref[...], 0.0)                     # (H0, TB)

    # Layer 1: (H1, H0) @ (H0, TB) -> (H1, TB)
    h1 = jnp.dot(w1, cast(h0), preferred_element_type=jnp.float32)
    h1 = jnp.maximum(h1 + b1_ref[...], 0.0)                     # (H1, TB)

    # Output head: (A, H1) @ (H1, TB) -> (A, TB)
    y = jnp.dot(w2, cast(h1), preferred_element_type=jnp.float32) + b2_ref[...]

    out_ref[...] = y.astype(out_ref.dtype)   # lane-dense, unmasked stores


def fully_connected_dqn_forward(x, params, *, block_batch=2048,
                                compute_dtype=None, x_buffers=2):
    """Forward pass of FullyConnectedDQN(state_dim, action_dim, sizes, relu).

    x: (batch, state_dim) float features (same layout the torch module sees).
    params: (w0, b0, w1, b1, w2, b2) with weights stored torch-style
            (out_dim, in_dim) and biases (out_dim, 1).
    compute_dtype: None -> pure float32 (matches the f32 reference exactly).
                   jnp.bfloat16 is opt-in (v6e/v7x only; expect ~1e-2 tol).
    x_buffers: pipeline depth for the x input (raise to 3 only if xprof shows
               exposed x DMA after enlarging block_batch).
    Returns (batch, action_dim) float32 Q-values.
    """
    w0, b0, w1, b1, w2, b2 = params
    batch, state_dim = x.shape
    action_dim = w2.shape[0]

    tb, b_pad = _choose_tiling(batch, block_batch)

    # Pre-transpose x so the kernel sees a lane-dense (state_dim, B) slab.
    # Any batch padding rides along the same fused XLA copy (no separate
    # jnp.pad HBM pass over x).
    x_t = x.T                                                 # (S, batch)
    if b_pad != batch:
        x_t = jnp.pad(x_t, ((0, 0), (0, b_pad - batch)))      # (S, b_pad)

    grid = (b_pad // tb,)

    def resident(arr):
        # Full-array block with a constant index_map -> stays VMEM-resident.
        return pl.BlockSpec(arr.shape, lambda i: tuple(0 for _ in arr.shape))

    x_spec_kwargs = {}
    if x_buffers != 2:
        x_spec_kwargs["pipeline_mode"] = pl.Buffered(x_buffers)
    x_spec = pl.BlockSpec((state_dim, tb), lambda i: (0, i), **x_spec_kwargs)

    kernel = functools.partial(_dqn_mlp_kernel, compute_dtype=compute_dtype)

    out_t = pl.pallas_call(
        kernel,
        out_shape=jax.ShapeDtypeStruct((action_dim, b_pad), jnp.float32),
        grid=grid,
        in_specs=[
            x_spec,                         # x^T: batch tiled on lanes
            resident(w0), resident(b0),
            resident(w1), resident(b1),
            resident(w2), resident(b2),
        ],
        # Output is (action_dim, B_pad): batch on lanes -> unmasked stores.
        out_specs=pl.BlockSpec((action_dim, tb), lambda i: (0, i)),
        compiler_params=pltpu.CompilerParams(
            dimension_semantics=("parallel",),   # megacore split on v7x
            vmem_limit_bytes=32 << 20,           # tiny footprint; safe on v7x
        ),
    )(x_t, w0, b0, w1, b1, w2, b2)

    # Restore torch orientation: (action_dim, B_pad) -> (batch, action_dim).
    # Slice + transpose fuse into a single XLA op.  If the consumer can take
    # (action_dim, batch) directly, return out_t[:, :batch] instead.
    return out_t[:, :batch].T


def init_params(key, state_dim, sizes, action_dim):
    """Deterministic gaussian init (mimics FullyConnectedNetwork's gaussian_fill_w_gain).

    Weights are stored torch.nn.Linear-style: (out_dim, in_dim). Biases (out_dim, 1).
    """
    dims = [state_dim] + list(sizes) + [action_dim]
    params = []
    for i in range(len(dims) - 1):
        key, wk = jax.random.split(key)
        fan_in = dims[i]
        gain = jnp.sqrt(2.0) if i < len(dims) - 2 else 1.0  # relu gain on hidden layers
        w = gain * jax.random.normal(
            wk, (dims[i + 1], dims[i]), jnp.float32) / jnp.sqrt(fan_in)
        b = jnp.zeros((dims[i + 1], 1), jnp.float32)
        params += [w, b]
    return tuple(params)


def reference_forward(x, params):
    w0, b0, w1, b1, w2, b2 = params
    h = jnp.maximum(x @ w0.T + b0[:, 0], 0.0)
    h = jnp.maximum(h @ w1.T + b1[:, 0], 0.0)
    return h @ w2.T + b2[:, 0]


if __name__ == "__main__":
    # Small shapes consistent with ReAgent's test config:
    # state_dim=8, sizes=[32, 16], action_dim=4, batch=2
    batch, state_dim, sizes, action_dim = 2, 8, [32, 16], 4

    key = jax.random.PRNGKey(0)
    pkey, xkey = jax.random.split(key)
    params = init_params(pkey, state_dim, sizes, action_dim)
    state_float_features = jax.random.normal(xkey, (batch, state_dim), jnp.float32)

    out = fully_connected_dqn_forward(state_float_features, params)
    out = jax.block_until_ready(out)

    ref = reference_forward(state_float_features, params)
    assert out.shape == (batch, action_dim)
    assert jnp.allclose(out, ref, atol=1e-5, rtol=1e-5)

    # Also exercise a larger, non-tile-multiple batch to cover the multi-step
    # (>= 2, even) grid path used on v7x.
    big_batch = 300
    xb = jax.random.normal(jax.random.PRNGKey(1), (big_batch, state_dim), jnp.float32)
    out_big = jax.block_until_ready(
        fully_connected_dqn_forward(xb, params, block_batch=128))
    assert out_big.shape == (big_batch, action_dim)
    assert jnp.allclose(out_big, reference_forward(xb, params), atol=1e-5, rtol=1e-5)

    print("KERNEL_OK")
</pallas_src>

<mosaic_0001>
module attributes {stable_mosaic.version = 11 : i64} {
  func.func @_dqn_mlp_kernel(%arg0: i32, %arg1: memref<8x128xf32, #tpu.memory_space<vmem>>, %arg2: memref<32x8xf32, #tpu.memory_space<vmem>>, %arg3: memref<32x1xf32, #tpu.memory_space<vmem>>, %arg4: memref<16x32xf32, #tpu.memory_space<vmem>>, %arg5: memref<16x1xf32, #tpu.memory_space<vmem>>, %arg6: memref<4x16xf32, #tpu.memory_space<vmem>>, %arg7: memref<4x1xf32, #tpu.memory_space<vmem>>, %arg8: memref<4x128xf32, #tpu.memory_space<vmem>>) attributes {dimension_semantics = [#tpu.dimension_semantics<parallel>], iteration_bounds = array<i64: 1>, scalar_prefetch = 0 : i64, scratch_operands = 0 : i64, tpu.core_type = #tpu.core_type<tc>, window_params = [{transform_indices = @transform_0, window_bounds = array<i64: 8, 128>}, {pipeline_mode = #tpu.pipeline_mode<synchronous>, transform_indices = @transform_1, window_bounds = array<i64: 32, 8>}, {pipeline_mode = #tpu.pipeline_mode<synchronous>, transform_indices = @transform_2, window_bounds = array<i64: 32, 1>}, {pipeline_mode = #tpu.pipeline_mode<synchronous>, transform_indices = @transform_3, window_bounds = array<i64: 16, 32>}, {pipeline_mode = #tpu.pipeline_mode<synchronous>, transform_indices = @transform_4, window_bounds = array<i64: 16, 1>}, {pipeline_mode = #tpu.pipeline_mode<synchronous>, transform_indices = @transform_5, window_bounds = array<i64: 4, 16>}, {pipeline_mode = #tpu.pipeline_mode<synchronous>, transform_indices = @transform_6, window_bounds = array<i64: 4, 1>}, {transform_indices = @transform_7, window_bounds = array<i64: 4, 128>}]} {
    %c0 = arith.constant 0 : index
    %c0_0 = arith.constant 0 : index
    %0 = vector.load %arg1[%c0, %c0_0] : memref<8x128xf32, #tpu.memory_space<vmem>>, vector<8x128xf32>
    %c0_1 = arith.constant 0 : index
    %c0_2 = arith.constant 0 : index
    %1 = vector.load %arg2[%c0_1, %c0_2] : memref<32x8xf32, #tpu.memory_space<vmem>>, vector<32x8xf32>
    %c0_3 = arith.constant 0 : index
    %c0_4 = arith.constant 0 : index
    %2 = vector.load %arg4[%c0_3, %c0_4] : memref<16x32xf32, #tpu.memory_space<vmem>>, vector<16x32xf32>
    %c0_5 = arith.constant 0 : index
    %c0_6 = arith.constant 0 : index
    %3 = vector.load %arg6[%c0_5, %c0_6] : memref<4x16xf32, #tpu.memory_space<vmem>>, vector<4x16xf32>
    %cst = arith.constant dense<0.000000e+00> : vector<32x128xf32>
    %4 = tpu.matmul %1, %0, %cst {dimension_numbers = #tpu.dot_dimension_numbers<[1], [0], [0], [1], [0, 0, 1, 1], [], []>} : vector<32x8xf32>, vector<8x128xf32>, vector<32x128xf32> -> vector<32x128xf32>
    %c0_7 = arith.constant 0 : index
    %c0_8 = arith.constant 0 : index
    %5 = vector.load %arg3[%c0_7, %c0_8] : memref<32x1xf32, #tpu.memory_space<vmem>>, vector<32x1xf32>
    %6 = vector.broadcast %5 : vector<32x1xf32> to vector<32x128xf32>
    %7 = arith.addf %4, %6 : vector<32x128xf32>
    %cst_9 = arith.constant 0.000000e+00 : f32
    %8 = vector.broadcast %cst_9 : f32 to vector<32x128xf32>
    %9 = arith.maximumf %7, %8 : vector<32x128xf32>
    %cst_10 = arith.constant dense<0.000000e+00> : vector<16x128xf32>
    %10 = tpu.matmul %2, %9, %cst_10 {dimension_numbers = #tpu.dot_dimension_numbers<[1], [0], [0], [1], [0, 0, 1, 1], [], []>} : vector<16x32xf32>, vector<32x128xf32>, vector<16x128xf32> -> vector<16x128xf32>
    %c0_11 = arith.constant 0 : index
    %c0_12 = arith.constant 0 : index
    %11 = vector.load %arg5[%c0_11, %c0_12] : memref<16x1xf32, #tpu.memory_space<vmem>>, vector<16x1xf32>
    %12 = vector.broadcast %11 : vector<16x1xf32> to vector<16x128xf32>
    %13 = arith.addf %10, %12 : vector<16x128xf32>
    %cst_13 = arith.constant 0.000000e+00 : f32
    %14 = vector.broadcast %cst_13 : f32 to vector<16x128xf32>
    %15 = arith.maximumf %13, %14 : vector<16x128xf32>
    %cst_14 = arith.constant dense<0.000000e+00> : vector<4x128xf32>
    %16 = tpu.matmul %3, %15, %cst_14 {dimension_numbers = #tpu.dot_dimension_numbers<[1], [0], [0], [1], [0, 0, 1, 1], [], []>} : vector<4x16xf32>, vector<16x128xf32>, vector<4x128xf32> -> vector<4x128xf32>
    %c0_15 = arith.constant 0 : index
    %c0_16 = arith.constant 0 : index
    %17 = vector.load %arg7[%c0_15, %c0_16] : memref<4x1xf32, #tpu.memory_space<vmem>>, vector<4x1xf32>
    %18 = vector.broadcast %17 : vector<4x1xf32> to vector<4x128xf32>
    %19 = arith.addf %16, %18 : vector<4x128xf32>
    %c0_17 = arith.constant 0 : index
    %c0_18 = arith.constant 0 : index
    %20 = vector.load %arg8[%c0_17, %c0_18] : memref<4x128xf32, #tpu.memory_space<vmem>>, vector<4x128xf32>
    tpu.vector_store %arg8[%c0_17, %c0_18], %19 {strides = array<i32>} : memref<4x128xf32, #tpu.memory_space<vmem>>, vector<4x128xf32>,
    return
  }
  func.func @transform_0(%arg0: i32) -> (i32, i32) {
    %c0_i32 = arith.constant 0 : i32
    %c0_i32_0 = arith.constant 0 : i32
    return %c0_i32, %arg0 : i32, i32
  }
  func.func @transform_1(%arg0: i32) -> (i32, i32) {
    %c0_i32 = arith.constant 0 : i32
    %c0_i32_0 = arith.constant 0 : i32
    %c0_i32_1 = arith.constant 0 : i32
    return %c0_i32, %c0_i32_0 : i32, i32
  }
  func.func @transform_2(%arg0: i32) -> (i32, i32) {
    %c0_i32 = arith.constant 0 : i32
    %c0_i32_0 = arith.constant 0 : i32
    %c0_i32_1 = arith.constant 0 : i32
    return %c0_i32, %c0_i32_0 : i32, i32
  }
  func.func @transform_3(%arg0: i32) -> (i32, i32) {
    %c0_i32 = arith.constant 0 : i32
    %c0_i32_0 = arith.constant 0 : i32
    %c0_i32_1 = arith.constant 0 : i32
    return %c0_i32, %c0_i32_0 : i32, i32
  }
  func.func @transform_4(%arg0: i32) -> (i32, i32) {
    %c0_i32 = arith.constant 0 : i32
    %c0_i32_0 = arith.constant 0 : i32
    %c0_i32_1 = arith.constant 0 : i32
    return %c0_i32, %c0_i32_0 : i32, i32
  }
  func.func @transform_5(%arg0: i32) -> (i32, i32) {
    %c0_i32 = arith.constant 0 : i32
    %c0_i32_0 = arith.constant 0 : i32
    %c0_i32_1 = arith.constant 0 : i32
    return %c0_i32, %c0_i32_0 : i32, i32
  }
  func.func @transform_6(%arg0: i32) -> (i32, i32) {
    %c0_i32 = arith.constant 0 : i32
    %c0_i32_0 = arith.constant 0 : i32
    %c0_i32_1 = arith.constant 0 : i32
    return %c0_i32, %c0_i32_0 : i32, i32
  }
  func.func @transform_7(%arg0: i32) -> (i32, i32) {
    %c0_i32 = arith.constant 0 : i32
    %c0_i32_0 = arith.constant 0 : i32
    return %c0_i32, %arg0 : i32, i32
  }
}

</mosaic_0001>

<bundles_post_ra>
// kernel: tpu_custom_call.1
= control target key start
LH: loop header
LB: loop body
LE: loop exit
PB: predicated region body
PF: predicated region fallthrough
CT: control target
= control target key end

     0   :  { %vm59_vm0 = vcmask 64512   ;;  %v441_v5 = vmov 0   ;;  %s549_s0 = inlined_call_operand.vmem [shape: f32[8,128], index: 0, kind: input, shape index: {}]   ;;  %s550_s1 = inlined_call_operand.vmem [shape: f32[32,8], index: 1, kind: input, shape index: {}]   ;;  %s551_s2 = inlined_call_operand.vmem [shape: f32[32,1], index: 2, kind: input, shape index: {}]   ;;  %s552_s3 = inlined_call_operand.vmem [shape: f32[16,32], index: 3, kind: input, shape index: {}]   ;;  %s553_s4 = inlined_call_operand.vmem [shape: f32[16,1], index: 4, kind: input, shape index: {}]   ;;  %s554_s5 = inlined_call_operand.vmem [shape: f32[4,16], index: 5, kind: input, shape index: {}]   ;;  %s555_s6 = inlined_call_operand.vmem [shape: f32[4,1], index: 6, kind: input, shape index: {}]   ;;  %s556_s7 = inlined_call_operand.hbm [shape: f32[4,128], index: 7, kind: output, shape index: {}]  }
   0x1   :  { %v27_v0 = vld [vmem:[%s549_s0] sm:$0xff]  ;;  %v29_v2 = vld [vmem:[%s550_s1 + $0x8] sm:$0xff]  ;;  %v30_v3 = vld [vmem:[%s550_s1 + $0x10] sm:$0xff]  ;;  %415 = vset.pattern.permute.xlu0 %v441_v5  ;;  %416 = vset.pattern.permute.xlu1 %v441_v5 }
   0x2   :  { %v28_v1 = vld [vmem:[%s550_s1] sm:$0xff]  ;;  %373 = vmatprep.subr.mxu0 %v27_v0  ;;  %v37_v6 = vld [vmem:[%s551_s2 + $0x10] sm:$0xff]  ;;  %v31_v7 = vld [vmem:[%s550_s1 + $0x18] sm:$0xff] }
   0x3   :  { %375 = vmatprep.mubr.msk.f32.mxu0 %vm59_vm0, %v28_v1  ;;  %v35_v4 = vld [vmem:[%s551_s2] sm:$0xff]  ;;  %374 = vmatpush3.msra.mxu0 %v27_v0  ;;  %v36_v8 = vld [vmem:[%s551_s2 + $0x8] sm:$0xff] }
   0x4   :  { %376 = vmatmul.mubr.msk.f32.vlgmr.msra.gmra.mrb[0].mxu0 %vm59_vm0, %v29_v2  ;;  %41 = vperm.xlu0 %415, %v35_v4  }
   0x5   :  { %378 = vmatprep.mubr.msk.f32.mxu0 %vm59_vm0, %v30_v3 }
   0x6   :  { %12 = vsyncpa [#allocation3], 0  ;;  %51 = vperm.xlu1 %416, %v37_v6   ;;  %v38_v9 = vld [vmem:[%s551_s2 + $0x18] sm:$0xff]  ;;  %v161_v10 = vld [vmem:[%s553_s4] sm:$0xff]  ;;  %vm173_vm1 = vcmask 261120   ;;  %v442_v33 = vmov 0.0|0.0  }
   0x7   :  { %v162_v11 = vld [vmem:[%s553_s4 + $0x8] sm:$0xff]  ;;  %v257_v12 = vld [vmem:[%s555_s6] sm:$0xf]  ;;  %407 = vmatprep.subr.bf16.mxu0 %v442_v33  ;;  %vm443_vm2 = vmmov 0   ;;  %v444_v34 = vmov 0.0   ;;  %vm263_vm3 = vcmask 130048  }
   0x8   :  { %379 = vmatmul.mubr.msk.f32.gmra.mrb[2].mxu0 %vm59_vm0, %v31_v7  ;;  %46 = vperm.xlu0 %415, %v36_v8   ;;  %v32_v13 = vld [vmem:[%s552_s3] sm:$0xff]  ;;  %v33_v32 = vld [vmem:[%s552_s3 + $0x8] sm:$0xff]  ;;  %s445_s3 = smov [#allocation2]  }
   0x9   :  { %389 = vmatprep.mubr.msk.f32.mxu1 %vm173_vm1, %v32_v13  ;;  %396 = vmatprep.mubr.msk.f32.mxu0 %vm443_vm2, %v444_v34  ;;  %v34_v44 = vld [vmem:[%s554_s5] sm:$0xf]  ;;  %s344_s26 = sshll.u32 %s445_s3, 4  ;;  %s345_s26 = int_to_ptr.vmem [resolvable:$true] %s344_s26 }
   0xa   :  { %56 = vperm.xlu1 %416, %v38_v9   ;;  %s417_s27 = scalar_lea.vmem %s345_s26, 64  ;;  %p422_p1 = scmp.lt.s32.totalorder %s345_s26, %s345_s26 }
   0xb   :  { %p418_p0 = scmp.ne.s32.totalorder %s345_s26, %s417_s27  ;;  %p423_p2 = scmp.lt.s32.totalorder %s417_s27, %s417_s27 }
   0xc   :  { %165 = vperm.xlu0 %415, %v161_v10  }
   0xd   :  { %p424_p3 = por %p423_p2, %p422_p1 }
   0xe   :  { %170 = vperm.xlu1 %416, %v162_v11  }
   0xf   :  { %p425_p4 = pnand %p424_p3, %p418_p0 }
  0x10   :  { %260 = vperm.xlu0 %415, %v257_v12  }
  0x83   :  { %v42_v14 = vpop.permute.xlu0 %41 }
  0x85   :  { %v52_v15 = vpop.permute.xlu1 %51 }
  0x87   :  { %v47_v16 = vpop.permute.xlu0 %46 }
  0x89   :  { %v57_v22 = vpop.permute.xlu1 %56 }
  0x8b   :  { %v166_v37 = vpop.permute.xlu0 %165 }
  0x8d   :  { %v171_v35 = vpop.permute.xlu1 %170 }
  0x8f   :  { %v261_v45 = vpop.permute.xlu0 %260 }
  0xd7   :  { %v377_v17 = vpop.f32.mrb[0].mxu0 }
  0xd8   :  { %v144_v18 = vadd.f32 %v377_v17, %v47_v16  ;;  %v138_v19 = vpop.f32.mrb[1].mxu0 }
  0xd9   :  { %v139_v20 = vadd.f32 %v138_v19, %v42_v14 }
  0xda   :  { %v158_v21 = vmax.f32 %v144_v18, 0.0 }
  0xdb   :  { %v157_v23 = vmax.f32 %v139_v20, 0.0  ;;  %v380_v24 = vpop.f32.mrb[2].mxu0 }
  0xdc   :  { %v154_v25 = vadd.f32 %v380_v24, %v57_v22  ;;  %v148_v26 = vpop.f32.mrb[3].mxu0 }
  0xdd   :  { %v149_v27 = vadd.f32 %v148_v26, %v52_v15  ;;  %v399_v28 = vpack.c.bf16 %v158_v21, %v157_v23 }
  0xde   :  { %v160_v29 = vmax.f32 %v154_v25, 0.0 }
  0xdf   :  { %v159_v30 = vmax.f32 %v149_v27, 0.0  ;;  %400 = vmatprep.subr.bf16.mxu1 %v399_v28 }
  0xe0   :  { %402 = vmatpush3.bf16.msra.mxu1 %v399_v28 }
  0xe1   :  { %v403_v31 = vpack.c.bf16 %v160_v29, %v159_v30 }
  0xe3   :  { %404 = vmatprep.subr.bf16.mxu1 %v403_v31 }
  0xe4   :  { %406 = vmatpush3.bf16.msra.mxu1 %v403_v31 }
  0xe7   :  { %390 = vmatmul.mubr.msk.f32.vlgmr.msra.gmra.mrb[0].mxu1 %vm173_vm1, %v33_v32 }
 0x1ba   :  { %v391_v36 = vpop.f32.mrb[0].mxu1 }
 0x1bb   :  { %v252_v38 = vadd.f32 %v391_v36, %v171_v35  ;;  %v246_v39 = vpop.f32.mrb[1].mxu1 }
 0x1bc   :  { %v247_v40 = vadd.f32 %v246_v39, %v166_v37 }
 0x1bd   :  { %v256_v41 = vmax.f32 %v252_v38, 0.0 }
 0x1be   :  { %v255_v42 = vmax.f32 %v247_v40, 0.0 }
 0x1c0   :  { %v408_v43 = vpack.c.bf16 %v256_v41, %v255_v42 }
 0x1c2   :  { %409 = vmatpush3.bf16.msra.mxu0 %v408_v43 }
 0x1c5   :  { %397 = vmatmul.mubr.msk.f32.vlgmr.msra.gmra.mrb[4].mxu0 %vm263_vm3, %v34_v44 }
 0x298   :  { %v333_v46 = vpop.f32.mrb[4].mxu0 }
 0x299   :  { %v334_v47 = vadd.f32 %v333_v46, %v261_v45  ;;  %v398_v48 = vpop.f32.mrb[5].mxu0 }
 0x29b   :  { %337 = vst [vmem:[#allocation2] sm:$0xf] %v334_v47 }
 0x29c   :  { %428 = shalt.err (!%p425_p4)
}
 0x29d   :  { %s429_s5 = scalar_lea.hbm %s556_s7, 64 }
 0x29e   :  { %p430_p5 = scmp.ne.s32.totalorder %s556_s7, %s429_s5  ;;  %p433_p6 = scmp.lt.u32.totalorder %s429_s5, %s556_s7 }
 0x2a0   :  { %p435_p7 = pnand %p433_p6, %p430_p5 }
 0x2a2   :  { %438 = shalt.err (!%p435_p7)
}
 0x2a3   :  { %347 = dma.vmem_to_hbm [thread:$0]  %s345_s26, 64, %s556_s7, [#allocation3]  }
 0x2a4   :  { %439 = dma.done.wait [#allocation3], 64  }
 0x2a5   :  { %440 = vsyncadd [#allocation3], 4294967232 }
 0x2a6   :  { %351 = vsyncpa [#allocation3], 1 }

</bundles_post_ra>
